<compile_context>
chip_gen: v5e
topology: v5e:2x2
jax: 0.10.0
libtpu: 0.0.40
codegen_flags: <defaults>
</compile_context>

<pallas_src>
import jax
import jax.numpy as jnp
from jax.experimental import pallas as pl
from jax.experimental.pallas import tpu as pltpu


def _round_up(n, m):
    return ((n + m - 1) // m) * m


def _leaky_relu(x, slope=0.2):
    return jnp.where(x >= 0, x, slope * x)


def generator_kernel(x_ref,
                     w1_ref, b1_ref,
                     w2_ref, b2_ref,
                     w3_ref, b3_ref,
                     w4_ref, b4_ref,
                     o_ref):
    # x_ref is already bf16 (cast once in the wrapper).  MXU in bf16,
    # accumulate + elementwise in f32 (portable to v5e's f32-only VPU/EUP).
    # Layer 1: Linear + LeakyReLU(0.2)
    h = jnp.dot(x_ref[...], w1_ref[...], preferred_element_type=jnp.float32)
    h = _leaky_relu(h + b1_ref[...])
    # Layer 2
    h = jnp.dot(h.astype(jnp.bfloat16), w2_ref[...],
                preferred_element_type=jnp.float32)
    h = _leaky_relu(h + b2_ref[...])
    # Layer 3
    h = jnp.dot(h.astype(jnp.bfloat16), w3_ref[...],
                preferred_element_type=jnp.float32)
    h = _leaky_relu(h + b3_ref[...])
    # Layer 4: Linear + tanh
    h = jnp.dot(h.astype(jnp.bfloat16), w4_ref[...],
                preferred_element_type=jnp.float32)
    h = jnp.tanh(h + b4_ref[...])
    o_ref[...] = h.astype(o_ref.dtype)


def generator_forward(x, params, *, batch_tile=2048, out_dtype=jnp.float32):
    """x: (B, input_size). params: [(w, b)] * 4, w stored as (in, out).

    Returns (B, 1, 16, 16) (dtype `out_dtype`) to match PyTorch's
    `x.view(-1, 1, 16, 16)`.
    """
    (w1, b1), (w2, b2), (w3, b3), (w4, b4) = params
    B, in_size = x.shape
    out_size = w4.shape[1]
    assert out_size == 256, "output_size must be 256 for view(-1, 1, 16, 16)"

    # Batch tile: multiple of 16 (bf16 sublane packing).  Cap at
    # round_up(ceil(B/2), 16) so the grid has >=2 steps whenever B allows it
    # (feeds both v7x TensorCores); cap at batch_tile (2048 default) so the
    # tb-scaled output tile + intermediates stay well inside the scoped-VMEM
    # defaults on all chips.  Raise vmem_limit_bytes if you push tb higher.
    tb = min(batch_tile, _round_up(pl.cdiv(B, 2), 16))
    grid = (pl.cdiv(B, tb),)   # ragged last block handled by Pallas masking

    # bf16 operands at the MXU: 2x matmul rate on v6e/v7x and half the
    # input/weight DMA bytes.  Biases stay f32 (elementwise path stays f32).
    xb = x.astype(jnp.bfloat16)
    w1b, w2b, w3b, w4b = (w.astype(jnp.bfloat16) for w in (w1, w2, w3, w4))

    def resident(shape):
        # Constant block index -> parameters stay resident in VMEM.
        return pl.BlockSpec(shape, lambda i: (0, 0))

    out2d = pl.pallas_call(
        generator_kernel,
        out_shape=jax.ShapeDtypeStruct((B, out_size), out_dtype),
        grid=grid,
        in_specs=[
            pl.BlockSpec((tb, in_size), lambda i: (i, 0)),   # x: tiled on B
            resident(w1b.shape), resident(b1.shape),
            resident(w2b.shape), resident(b2.shape),
            resident(w3b.shape), resident(b3.shape),
            resident(w4b.shape), resident(b4.shape),
        ],
        out_specs=pl.BlockSpec((tb, out_size), lambda i: (i, 0)),
        compiler_params=pltpu.CompilerParams(
            dimension_semantics=("parallel",)),
    )(xb, w1b, b1, w2b, b2, w3b, b3, w4b, b4)

    # Pure reshape glue for .view(-1, 1, 16, 16) (metadata only).
    return out2d.reshape(-1, 1, 16, 16)


def init_params(key, input_size, hidden_size, output_size):
    """PyTorch-style uniform(-1/sqrt(fan_in), 1/sqrt(fan_in)) init."""
    dims = [input_size, hidden_size[0], hidden_size[1], hidden_size[2],
            output_size]
    params = []
    for i in range(4):
        fan_in, fan_out = dims[i], dims[i + 1]
        key, kw, kb = jax.random.split(key, 3)
        bound = 1.0 / jnp.sqrt(fan_in)
        # weight stored as (in, out) == PyTorch weight.T so hot path is x @ W
        w = jax.random.uniform(kw, (fan_in, fan_out), jnp.float32, -bound, bound)
        b = jax.random.uniform(kb, (1, fan_out), jnp.float32, -bound, bound)
        params.append((w, b))
    return params


def _reference_forward(x, params, *, bf16_matmul=True):
    """Mirrors the kernel arithmetic (bf16 at the dot, f32 elsewhere)."""
    h = x
    for i, (w, b) in enumerate(params):
        if bf16_matmul:
            h = jnp.dot(h.astype(jnp.bfloat16), w.astype(jnp.bfloat16),
                        preferred_element_type=jnp.float32)
        else:
            h = h @ w
        h = h + b
        h = jnp.where(h >= 0, h, 0.2 * h) if i < 3 else jnp.tanh(h)
    return h.reshape(-1, 1, 16, 16)


if __name__ == "__main__":
    key = jax.random.PRNGKey(0)
    input_size = 32
    hidden_size = (64, 128, 256)
    output_size = 256  # must be 256 so view(-1, 1, 16, 16) is valid
    batch = 2

    kx, kp = jax.random.split(key)
    x = jax.random.normal(kx, (batch, input_size), dtype=jnp.float32)
    params = init_params(kp, input_size, hidden_size, output_size)

    # Default (f32 output) path.
    out = generator_forward(x, params)
    out = jax.block_until_ready(out)
    assert out.shape == (batch, 1, 16, 16), out.shape
    assert out.dtype == jnp.float32, out.dtype

    # Check vs a reference using the same bf16-at-the-MXU arithmetic.
    ref_bf16 = _reference_forward(x, params, bf16_matmul=True)
    assert jnp.allclose(out, ref_bf16, atol=2e-3, rtol=2e-3), \
        "mismatch vs bf16-matmul reference"

    # Sanity check vs the full-f32 reference (loose tol: bf16 matmul error).
    ref_f32 = _reference_forward(x, params, bf16_matmul=False)
    assert jnp.allclose(out, ref_f32, atol=5e-2, rtol=5e-2), \
        "mismatch vs f32 reference"

    # Optional bf16-output path (halves the dominant HBM store traffic).
    out_bf16 = jax.block_until_ready(
        generator_forward(x, params, out_dtype=jnp.bfloat16))
    assert out_bf16.shape == (batch, 1, 16, 16)
    assert out_bf16.dtype == jnp.bfloat16
    assert jnp.allclose(out_bf16.astype(jnp.float32), ref_bf16,
                        atol=1e-2, rtol=1e-2), "mismatch on bf16-output path"

    # Exercise a multi-step grid with a ragged last block (B=50 -> tb=32,
    # grid=(2,), last block masked).
    kx2, _ = jax.random.split(kx)
    x2 = jax.random.normal(kx2, (50, input_size), dtype=jnp.float32)
    out2 = jax.block_until_ready(generator_forward(x2, params))
    ref2 = _reference_forward(x2, params, bf16_matmul=True)
    assert out2.shape == (50, 1, 16, 16)
    assert jnp.allclose(out2, ref2, atol=2e-3, rtol=2e-3), \
        "mismatch on ragged multi-tile batch"

    print("KERNEL_OK")
</pallas_src>

<mosaic_0001>
module attributes {stable_mosaic.version = 11 : i64} {
  func.func @generator_kernel(%arg0: i32, %arg1: memref<16x32xbf16, #tpu.memory_space<vmem>>, %arg2: memref<32x64xbf16, #tpu.memory_space<vmem>>, %arg3: memref<1x64xf32, #tpu.memory_space<vmem>>, %arg4: memref<64x128xbf16, #tpu.memory_space<vmem>>, %arg5: memref<1x128xf32, #tpu.memory_space<vmem>>, %arg6: memref<128x256xbf16, #tpu.memory_space<vmem>>, %arg7: memref<1x256xf32, #tpu.memory_space<vmem>>, %arg8: memref<256x256xbf16, #tpu.memory_space<vmem>>, %arg9: memref<1x256xf32, #tpu.memory_space<vmem>>, %arg10: memref<16x256xf32, #tpu.memory_space<vmem>>) attributes {dimension_semantics = [#tpu.dimension_semantics<parallel>], iteration_bounds = array<i64: 1>, scalar_prefetch = 0 : i64, scratch_operands = 0 : i64, tpu.core_type = #tpu.core_type<tc>, window_params = [{transform_indices = @transform_0, window_bounds = array<i64: 16, 32>}, {pipeline_mode = #tpu.pipeline_mode<synchronous>, transform_indices = @transform_1, window_bounds = array<i64: 32, 64>}, {pipeline_mode = #tpu.pipeline_mode<synchronous>, transform_indices = @transform_2, window_bounds = array<i64: 1, 64>}, {pipeline_mode = #tpu.pipeline_mode<synchronous>, transform_indices = @transform_3, window_bounds = array<i64: 64, 128>}, {pipeline_mode = #tpu.pipeline_mode<synchronous>, transform_indices = @transform_4, window_bounds = array<i64: 1, 128>}, {pipeline_mode = #tpu.pipeline_mode<synchronous>, transform_indices = @transform_5, window_bounds = array<i64: 128, 256>}, {pipeline_mode = #tpu.pipeline_mode<synchronous>, transform_indices = @transform_6, window_bounds = array<i64: 1, 256>}, {pipeline_mode = #tpu.pipeline_mode<synchronous>, transform_indices = @transform_7, window_bounds = array<i64: 256, 256>}, {pipeline_mode = #tpu.pipeline_mode<synchronous>, transform_indices = @transform_8, window_bounds = array<i64: 1, 256>}, {transform_indices = @transform_9, window_bounds = array<i64: 16, 256>}]} {
    %c0 = arith.constant 0 : index
    %c0_0 = arith.constant 0 : index
    %0 = vector.load %arg1[%c0, %c0_0] : memref<16x32xbf16, #tpu.memory_space<vmem>>, vector<16x32xbf16>
    %c0_1 = arith.constant 0 : index
    %c0_2 = arith.constant 0 : index
    %1 = vector.load %arg2[%c0_1, %c0_2] : memref<32x64xbf16, #tpu.memory_space<vmem>>, vector<32x64xbf16>
    %cst = arith.constant dense<0.000000e+00> : vector<16x64xf32>
    %2 = tpu.matmul %0, %1, %cst {dimension_numbers = #tpu.dot_dimension_numbers<[1], [0], [0], [1], [0, 0, 1, 1], [], []>} : vector<16x32xbf16>, vector<32x64xbf16>, vector<16x64xf32> -> vector<16x64xf32>
    %c0_3 = arith.constant 0 : index
    %c0_4 = arith.constant 0 : index
    %3 = vector.load %arg3[%c0_3, %c0_4] : memref<1x64xf32, #tpu.memory_space<vmem>>, vector<1x64xf32>
    %4 = vector.broadcast %3 : vector<1x64xf32> to vector<16x64xf32>
    %5 = arith.addf %2, %4 : vector<16x64xf32>
    %cst_5 = arith.constant 0.000000e+00 : f32
    %6 = vector.broadcast %cst_5 : f32 to vector<16x64xf32>
    %7 = arith.cmpf oge, %5, %6 : vector<16x64xf32>
    %cst_6 = arith.constant 2.000000e-01 : f32
    %8 = vector.broadcast %cst_6 : f32 to vector<16x64xf32>
    %9 = arith.mulf %8, %5 : vector<16x64xf32>
    %10 = arith.select %7, %5, %9 : vector<16x64xi1>, vector<16x64xf32>
    %11 = arith.truncf %10 : vector<16x64xf32> to vector<16x64xbf16>
    %c0_7 = arith.constant 0 : index
    %c0_8 = arith.constant 0 : index
    %12 = vector.load %arg4[%c0_7, %c0_8] : memref<64x128xbf16, #tpu.memory_space<vmem>>, vector<64x128xbf16>
    %cst_9 = arith.constant dense<0.000000e+00> : vector<16x128xf32>
    %13 = tpu.matmul %11, %12, %cst_9 {dimension_numbers = #tpu.dot_dimension_numbers<[1], [0], [0], [1], [0, 0, 1, 1], [], []>} : vector<16x64xbf16>, vector<64x128xbf16>, vector<16x128xf32> -> vector<16x128xf32>
    %c0_10 = arith.constant 0 : index
    %c0_11 = arith.constant 0 : index
    %14 = vector.load %arg5[%c0_10, %c0_11] : memref<1x128xf32, #tpu.memory_space<vmem>>, vector<1x128xf32>
    %15 = vector.broadcast %14 : vector<1x128xf32> to vector<16x128xf32>
    %16 = arith.addf %13, %15 : vector<16x128xf32>
    %cst_12 = arith.constant 0.000000e+00 : f32
    %17 = vector.broadcast %cst_12 : f32 to vector<16x128xf32>
    %18 = arith.cmpf oge, %16, %17 : vector<16x128xf32>
    %cst_13 = arith.constant 2.000000e-01 : f32
    %19 = vector.broadcast %cst_13 : f32 to vector<16x128xf32>
    %20 = arith.mulf %19, %16 : vector<16x128xf32>
    %21 = arith.select %18, %16, %20 : vector<16x128xi1>, vector<16x128xf32>
    %22 = arith.truncf %21 : vector<16x128xf32> to vector<16x128xbf16>
    %c0_14 = arith.constant 0 : index
    %c0_15 = arith.constant 0 : index
    %23 = vector.load %arg6[%c0_14, %c0_15] : memref<128x256xbf16, #tpu.memory_space<vmem>>, vector<128x256xbf16>
    %cst_16 = arith.constant dense<0.000000e+00> : vector<16x256xf32>
    %24 = tpu.matmul %22, %23, %cst_16 {dimension_numbers = #tpu.dot_dimension_numbers<[1], [0], [0], [1], [0, 0, 1, 1], [], []>} : vector<16x128xbf16>, vector<128x256xbf16>, vector<16x256xf32> -> vector<16x256xf32>
    %c0_17 = arith.constant 0 : index
    %c0_18 = arith.constant 0 : index
    %25 = vector.load %arg7[%c0_17, %c0_18] : memref<1x256xf32, #tpu.memory_space<vmem>>, vector<1x256xf32>
    %26 = vector.broadcast %25 : vector<1x256xf32> to vector<16x256xf32>
    %27 = arith.addf %24, %26 : vector<16x256xf32>
    %cst_19 = arith.constant 0.000000e+00 : f32
    %28 = vector.broadcast %cst_19 : f32 to vector<16x256xf32>
    %29 = arith.cmpf oge, %27, %28 : vector<16x256xf32>
    %cst_20 = arith.constant 2.000000e-01 : f32
    %30 = vector.broadcast %cst_20 : f32 to vector<16x256xf32>
    %31 = arith.mulf %30, %27 : vector<16x256xf32>
    %32 = arith.select %29, %27, %31 : vector<16x256xi1>, vector<16x256xf32>
    %33 = arith.truncf %32 : vector<16x256xf32> to vector<16x256xbf16>
    %c0_21 = arith.constant 0 : index
    %c0_22 = arith.constant 0 : index
    %34 = vector.load %arg8[%c0_21, %c0_22] : memref<256x256xbf16, #tpu.memory_space<vmem>>, vector<256x256xbf16>
    %cst_23 = arith.constant dense<0.000000e+00> : vector<16x256xf32>
    %35 = tpu.matmul %33, %34, %cst_23 {dimension_numbers = #tpu.dot_dimension_numbers<[1], [0], [0], [1], [0, 0, 1, 1], [], []>} : vector<16x256xbf16>, vector<256x256xbf16>, vector<16x256xf32> -> vector<16x256xf32>
    %c0_24 = arith.constant 0 : index
    %c0_25 = arith.constant 0 : index
    %36 = vector.load %arg9[%c0_24, %c0_25] : memref<1x256xf32, #tpu.memory_space<vmem>>, vector<1x256xf32>
    %37 = vector.broadcast %36 : vector<1x256xf32> to vector<16x256xf32>
    %38 = arith.addf %35, %37 : vector<16x256xf32>
    %39 = math.tanh %38 : vector<16x256xf32>
    %c0_26 = arith.constant 0 : index
    %c0_27 = arith.constant 0 : index
    %40 = vector.load %arg10[%c0_26, %c0_27] : memref<16x256xf32, #tpu.memory_space<vmem>>, vector<16x256xf32>
    tpu.vector_store %arg10[%c0_26, %c0_27], %39 {strides = array<i32>} : memref<16x256xf32, #tpu.memory_space<vmem>>, vector<16x256xf32>,
    return
  }
  func.func @transform_0(%arg0: i32) -> (i32, i32) {
    %c0_i32 = arith.constant 0 : i32
    %c0_i32_0 = arith.constant 0 : i32
    return %arg0, %c0_i32 : i32, i32
  }
  func.func @transform_1(%arg0: i32) -> (i32, i32) {
    %c0_i32 = arith.constant 0 : i32
    %c0_i32_0 = arith.constant 0 : i32
    %c0_i32_1 = arith.constant 0 : i32
    return %c0_i32, %c0_i32_0 : i32, i32
  }
  func.func @transform_2(%arg0: i32) -> (i32, i32) {
    %c0_i32 = arith.constant 0 : i32
    %c0_i32_0 = arith.constant 0 : i32
    %c0_i32_1 = arith.constant 0 : i32
    return %c0_i32, %c0_i32_0 : i32, i32
  }
  func.func @transform_3(%arg0: i32) -> (i32, i32) {
    %c0_i32 = arith.constant 0 : i32
    %c0_i32_0 = arith.constant 0 : i32
    %c0_i32_1 = arith.constant 0 : i32
    return %c0_i32, %c0_i32_0 : i32, i32
  }
  func.func @transform_4(%arg0: i32) -> (i32, i32) {
    %c0_i32 = arith.constant 0 : i32
    %c0_i32_0 = arith.constant 0 : i32
    %c0_i32_1 = arith.constant 0 : i32
    return %c0_i32, %c0_i32_0 : i32, i32
  }
  func.func @transform_5(%arg0: i32) -> (i32, i32) {
    %c0_i32 = arith.constant 0 : i32
    %c0_i32_0 = arith.constant 0 : i32
    %c0_i32_1 = arith.constant 0 : i32
    return %c0_i32, %c0_i32_0 : i32, i32
  }
  func.func @transform_6(%arg0: i32) -> (i32, i32) {
    %c0_i32 = arith.constant 0 : i32
    %c0_i32_0 = arith.constant 0 : i32
    %c0_i32_1 = arith.constant 0 : i32
    return %c0_i32, %c0_i32_0 : i32, i32
  }
  func.func @transform_7(%arg0: i32) -> (i32, i32) {
    %c0_i32 = arith.constant 0 : i32
    %c0_i32_0 = arith.constant 0 : i32
    %c0_i32_1 = arith.constant 0 : i32
    return %c0_i32, %c0_i32_0 : i32, i32
  }
  func.func @transform_8(%arg0: i32) -> (i32, i32) {
    %c0_i32 = arith.constant 0 : i32
    %c0_i32_0 = arith.constant 0 : i32
    %c0_i32_1 = arith.constant 0 : i32
    return %c0_i32, %c0_i32_0 : i32, i32
  }
  func.func @transform_9(%arg0: i32) -> (i32, i32) {
    %c0_i32 = arith.constant 0 : i32
    %c0_i32_0 = arith.constant 0 : i32
    return %arg0, %c0_i32 : i32, i32
  }
}

</mosaic_0001>

<bundles_post_ra>
// kernel: tpu_custom_call.1
= control target key start
LH: loop header
LB: loop body
LE: loop exit
PB: predicated region body
PF: predicated region fallthrough
CT: control target
= control target key end

     0   :  { %14 = vsyncpa [#allocation3], 0  ;;  %s1355_s0 = inlined_call_operand.hbm [shape: bf16[2,32], index: 0, kind: input, shape index: {}]   ;;  %s1356_s1 = inlined_call_operand.hbm [shape: bf16[32,64], index: 1, kind: input, shape index: {}]   ;;  %s1357_s2 = inlined_call_operand.hbm [shape: f32[1,64], index: 2, kind: input, shape index: {}]   ;;  %s1358_s3 = inlined_call_operand.hbm [shape: bf16[64,128], index: 3, kind: input, shape index: {}]   ;;  %s1359_s4 = inlined_call_operand.hbm [shape: f32[1,128], index: 4, kind: input, shape index: {}]   ;;  %s1360_s5 = inlined_call_operand.hbm [shape: bf16[128,256], index: 5, kind: input, shape index: {}]   ;;  %s1361_s6 = inlined_call_operand.vmem [shape: f32[1,256], index: 6, kind: input, shape index: {}]   ;;  %s1362_s7 = inlined_call_operand.hbm [shape: bf16[256,256], index: 7, kind: input, shape index: {}]   ;;  %s1363_s8 = inlined_call_operand.vmem [shape: f32[1,256], index: 8, kind: input, shape index: {}]   ;;  %s1364_s9 = inlined_call_operand.hbm [shape: f32[2,256], index: 9, kind: output, shape index: {}]  }
   0x1   :  { %15 = vsyncpa [#allocation6], 0 }
   0x2   :  { %16 = vsyncpa [#allocation9], 0 }
   0x3   :  { %17 = vsyncpa [#allocation12], 0 }
   0x4   :  { %18 = vsyncpa [#allocation4], 0  ;;  %s36_s11 = sshll.u32 %s1356_s1, 4  ;;  %s37_s11 = int_to_ptr.hbm [resolvable:$true] %s36_s11 }
   0x5   :  { %22 = vsyncadd [#allocation3], 112  ;;  %s1238_s12 = smov [#allocation5]   ;;  %s60_s16 = sshll.u32 %s1358_s3, 4  ;;  %s61_s16 = int_to_ptr.hbm [resolvable:$true] %s60_s16 }
   0x6   :  { %s38_s13 = sshll.u32 %s1238_s12, 4  ;;  %s1239_s17 = smov 64   ;;  %s39_s13 = int_to_ptr.vmem [resolvable:$true] %s38_s13 }
   0x7   :  { %s1240_s18 = smov 4   ;;  %s1241_s19 = smov [#allocation8]  }
   0x8   :  { %44 = dma.hbm_to_vmem [thread:$0]  %s37_s11, 256, %s39_s13, [#allocation6], %s1239_s17, %s1239_s17, %s1240_s18  }
   0x9   :  { %s62_s20 = sshll.u32 %s1241_s19, 4  ;;  %s84_s22 = sshll.u32 %s1360_s5, 4  ;;  %s63_s20 = int_to_ptr.vmem [resolvable:$true] %s62_s20  ;;  %s85_s22 = int_to_ptr.hbm [resolvable:$true] %s84_s22 }
   0xa   :  { %68 = dma.hbm_to_vmem [thread:$0]  %s61_s16, 512, %s63_s20, [#allocation9], %s1239_s17, %s1239_s17, %s1240_s18  }
   0xb   :  { %s1242_s3 = smov [#allocation11]   ;;  %s23_s26 = sshll.u32 %s1355_s0, 4  ;;  %s24_s26 = int_to_ptr.hbm [resolvable:$true] %s23_s26 }
   0xc   :  { %s86_s23 = sshll.u32 %s1242_s3, 4  ;;  %s1243_s27 = smov 128   ;;  %s87_s23 = int_to_ptr.vmem [resolvable:$true] %s86_s23 }
   0xd   :  { %s1244_s28 = smov 8   ;;  %s1245_s5 = smov [#allocation2]  }
   0xe   :  { %92 = dma.hbm_to_vmem [thread:$0]  %s85_s22, 2048, %s87_s23, [#allocation12], %s1243_s27, %s1243_s27, %s1244_s28  }
   0xf   :  { %s25_s29 = sshll.u32 %s1245_s5, 4  ;;  %s1246_s30 = smov 16   ;;  %s26_s29 = int_to_ptr.vmem [resolvable:$true] %s25_s29 }
  0x10   :  { %s1247_s10 = smov 1   ;;  %s50_s13 = sshll.u32 %s1357_s2, 4  ;;  %s51_s13 = int_to_ptr.hbm [resolvable:$true] %s50_s13 }
  0x11   :  { %31 = dma.hbm_to_vmem [thread:$0]  %s24_s26, 16, %s26_s29, [#allocation3], %s1246_s30, %s1246_s30, %s1247_s10  }
  0x12   :  { %s1248_s14 = smov [#allocation7]   ;;  %s74_s19 = sshll.u32 %s1359_s4, 4  ;;  %s75_s19 = int_to_ptr.hbm [resolvable:$true] %s74_s19 }
  0x13   :  { %s52_s0 = sshll.u32 %s1248_s14, 4  ;;  %s1249_s20 = smov [#allocation10]   ;;  %s53_s0 = int_to_ptr.vmem [resolvable:$true] %s52_s0 }
  0x14   :  { %55 = dma.hbm_to_vmem [thread:$0]  %s51_s13, 16, %s53_s0, [#allocation6]  }
  0x15   :  { %s76_s21 = sshll.u32 %s1249_s20, 4  ;;  %s99_s3 = sshll.u32 %s1362_s7, 4  ;;  %s77_s21 = int_to_ptr.vmem [resolvable:$true] %s76_s21  ;;  %s100_s3 = int_to_ptr.hbm [resolvable:$true] %s99_s3 }
  0x16   :  { %79 = dma.hbm_to_vmem [thread:$0]  %s75_s19, 16, %s77_s21, [#allocation9]  }
  0x17   :  { %s1250_s2 = smov [#allocation13]  }
  0x18   :  { %s101_s23 = sshll.u32 %s1250_s2, 4  ;;  %s102_s23 = int_to_ptr.vmem [resolvable:$true] %s101_s23 }
  0x19   :  { %107 = dma.hbm_to_vmem [thread:$0]  %s100_s3, 4096, %s102_s23, [#allocation12], %s1243_s27, %s1243_s27, %s1244_s28  }
  0x1a   :  { %1228 = dma.done.wait [#allocation3], 128  }
  0x1b   :  { %1229 = vsyncadd [#allocation3], 4294967168 }
  0x1c   :  { %1230 = dma.done.wait [#allocation6], 272  }
  0x1d   :  { %1231 = vsyncadd [#allocation6], 4294967024 }
  0x1e   :  { %1232 = dma.done.wait [#allocation9], 528  }
  0x1f   :  { %1233 = vsyncadd [#allocation9], 4294966768 }
  0x20   :  { %1234 = dma.done.wait [#allocation12], 6144  }
  0x21   :  { %1235 = vsyncadd [#allocation12], 4294961152  ;;  %v959_v0 = vld [vmem:[#allocation5 + $0x8] sm:$0xff]  ;;  %v139_v1 = vld [vmem:[#allocation2] sm:$0x1]  ;;  %vm191_vm0 = vcmask 261120  }
  0x22   :  { %v140_v2 = vld [vmem:[#allocation2 + $0x1] sm:$0x1]  ;;  %200 = vmatpush.bf16.msra.mxu0 %v959_v0  ;;  %v958_v3 = vld [vmem:[#allocation5] sm:$0xff]  ;;  %v141_v4 = vld [vmem:[#allocation2 + $0x2] sm:$0x1]  ;;  %vm251_vm3 = vcmask 523264  }
  0x23   :  { %v142_v5 = vld [vmem:[#allocation2 + $0x3] sm:$0x1]  ;;  %156 = vst [vmem:[#allocation1] ss:$9 sm:$0xff] %v139_v1  ;;  %v143_v6 = vld [vmem:[#allocation2 + $0x4] sm:$0x1] }
  0x24   :  { %159 = vst [vmem:[#allocation1 + $0x1] ss:$9 sm:$0xff] %v140_v2  ;;  %v144_v7 = vld [vmem:[#allocation2 + $0x5] sm:$0x1]  ;;  %v145_v8 = vld [vmem:[#allocation2 + $0x6] sm:$0x1] }
  0x25   :  { %162 = vst [vmem:[#allocation1 + $0x2] ss:$9 sm:$0xff] %v141_v4  ;;  %v146_v9 = vld [vmem:[#allocation2 + $0x7] sm:$0x1]  ;;  %v963_v11 = vld [vmem:[#allocation8 + $0x18] sm:$0xff]  ;;  %v962_v12 = vld [vmem:[#allocation8 + $0x10] sm:$0xff] }
  0x26   :  { %201 = vmatpush.bf16.msra.mxu0 %v958_v3  ;;  %165 = vst [vmem:[#allocation1 + $0x3] ss:$9 sm:$0xff] %v142_v5  ;;  %259 = vmatpush.bf16.msra.mxu1 %v963_v11  ;;  %v961_v13 = vld [vmem:[#allocation8 + $0x8] sm:$0xff]  ;;  %v960_v14 = vld [vmem:[#allocation8] sm:$0xff]  ;;  %v824_v15 = vld [vmem:[#allocation11 + $0x70] sm:$0xf] }
  0x27   :  { %168 = vst [vmem:[#allocation1 + $0x4] ss:$9 sm:$0xff] %v143_v6  ;;  %v979_v16 = vld [vmem:[#allocation11 + $0x74] sm:$0xf0]  ;;  %v978_v17 = vld [vmem:[#allocation11 + $0x74] sm:$0xf] }
  0x28   :  { %171 = vst [vmem:[#allocation1 + $0x5] ss:$9 sm:$0xff] %v144_v7  ;;  %v825_v18 = vor.u32 %v979_v16, %v824_v15  ;;  %v826_v19 = vld [vmem:[#allocation11 + $0x78] sm:$0xf0]  ;;  %v816_v20 = vld [vmem:[#allocation11 + $0x60] sm:$0xf] }
  0x29   :  { %174 = vst [vmem:[#allocation1 + $0x6] ss:$9 sm:$0xff] %v145_v8  ;;  %v977_v21 = vld [vmem:[#allocation11 + $0x64] sm:$0xf0]  ;;  %v829_v22 = vor.u32 %v978_v17, %v826_v19  ;;  %v976_v23 = vld [vmem:[#allocation11 + $0x64] sm:$0xf] }
  0x2a   :  { %177 = vst [vmem:[#allocation1 + $0x7] ss:$9 sm:$0xff] %v146_v9  ;;  %260 = vmatpush.bf16.msra.mxu1 %v962_v12  ;;  %v818_v24 = vld [vmem:[#allocation11 + $0x68] sm:$0xf0]  ;;  %378 = vmatpush.bf16.msra.mxu2 %v825_v18  ;;  %v817_v25 = vor.u32 %v977_v21, %v816_v20  ;;  %v808_v27 = vld [vmem:[#allocation11 + $0x50] sm:$0xf] }
  0x2b   :  { %392 = vmatpush.bf16.msra.mxu3 %v829_v22  ;;  %v821_v26 = vor.u32 %v976_v23, %v818_v24  ;;  %v975_v28 = vld [vmem:[#allocation11 + $0x54] sm:$0xf0]  ;;  %v974_v29 = vld [vmem:[#allocation11 + $0x54] sm:$0xf]  ;;  %v810_v30 = vld [vmem:[#allocation11 + $0x58] sm:$0xf0] }
  0x2c   :  { %v809_v31 = vor.u32 %v975_v28, %v808_v27  ;;  %v813_v32 = vor.u32 %v974_v29, %v810_v30  ;;  %v800_v33 = vld [vmem:[#allocation11 + $0x40] sm:$0xf]  ;;  %v973_v34 = vld [vmem:[#allocation11 + $0x44] sm:$0xf0]  ;;  %v972_v35 = vld [vmem:[#allocation11 + $0x44] sm:$0xf] }
  0x2d   :  { %v802_v36 = vld [vmem:[#allocation11 + $0x48] sm:$0xf0]  ;;  %v801_v37 = vor.u32 %v973_v34, %v800_v33  ;;  %v1026_v40 = vld [vmem:[#allocation7] ss:$0 sm:$0xff]  ;;  %v792_v49 = vld [vmem:[#allocation11 + $0x30] sm:$0xf] }
  0x2e   :  { %261 = vmatpush.bf16.msra.mxu1 %v961_v13  ;;  %379 = vmatpush.bf16.msra.mxu2 %v817_v25  ;;  %v805_v38 = vor.u32 %v972_v35, %v802_v36  ;;  %v971_v50 = vld [vmem:[#allocation11 + $0x34] sm:$0xf0]  ;;  %v970_v51 = vld [vmem:[#allocation11 + $0x34] sm:$0xf]  ;;  %v794_v53 = vld [vmem:[#allocation11 + $0x38] sm:$0xf0] }
  0x2f   :  { %393 = vmatpush.bf16.msra.mxu3 %v821_v26  ;;  %v793_v52 = vor.u32 %v971_v50, %v792_v49  ;;  %v797_v54 = vor.u32 %v970_v51, %v794_v53  ;;  %v784_v55 = vld [vmem:[#allocation11 + $0x20] sm:$0xf]  ;;  %v969_v56 = vld [vmem:[#allocation11 + $0x24] sm:$0xf0]  ;;  %v968_v57 = vld [vmem:[#allocation11 + $0x24] sm:$0xf] }
  0x30   :  { %v785_v58 = vor.u32 %v969_v56, %v784_v55  ;;  %v786_v59 = vld [vmem:[#allocation11 + $0x28] sm:$0xf0]  ;;  %v776_v61 = vld [vmem:[#allocation11 + $0x10] sm:$0xf]  ;;  %v967_v62 = vld [vmem:[#allocation11 + $0x14] sm:$0xf0] }
  0x31   :  { %v178_v10 = vld [vmem:[#allocation1] sm:$0xff]  ;;  %v789_v60 = vor.u32 %v968_v57, %v786_v59  ;;  %v966_v63 = vld [vmem:[#allocation11 + $0x14] sm:$0xf]  ;;  %v777_v0 = vor.u32 %v967_v62, %v776_v61  ;;  %v965_v4 = vld [vmem:[#allocation11 + $0x4] sm:$0xf0]  ;;  %vm684_vm10 = vcmask 1041408  }
  0x32   :  { %748 = vmatmul.msk.bf16.vlgmr.msra.gmra.mxu0 %vm191_vm0, %v178_v10  ;;  %262 = vmatpush.bf16.msra.mxu1 %v960_v14  ;;  %v778_v1 = vld [vmem:[#allocation11 + $0x18] sm:$0xf0]  ;;  %v768_v3 = vld [vmem:[#allocation11] sm:$0xf]  ;;  %v964_v5 = vld [vmem:[#allocation11 + $0x4] sm:$0xf] }
  0x33   :  { %380 = vmatpush.bf16.msra.mxu2 %v809_v31  ;;  %394 = vmatpush.bf16.msra.mxu3 %v813_v32  ;;  %v781_v2 = vor.u32 %v966_v63, %v778_v1  ;;  %v769_v6 = vor.u32 %v965_v4, %v768_v3  ;;  %v770_v7 = vld [vmem:[#allocation11 + $0x8] sm:$0xf0]  ;;  %v888_v9 = vld [vmem:[#allocation13 + $0x70] sm:$0xf]  ;;  %v995_v10 = vld [vmem:[#allocation13 + $0x74] sm:$0xf0] }
  0x34   :  { %v773_v8 = vor.u32 %v964_v5, %v770_v7  ;;  %v952_v11 = vld [vmem:[#allocation13 + $0xf0] sm:$0xf]  ;;  %v889_v12 = vor.u32 %v995_v10, %v888_v9  ;;  %v1011_v13 = vld [vmem:[#allocation13 + $0xf4] sm:$0xf0]  ;;  %v994_v14 = vld [vmem:[#allocation13 + $0x74] sm:$0xf] }
  0x35   :  { %v890_v15 = vld [vmem:[#allocation13 + $0x78] sm:$0xf0]  ;;  %v953_v16 = vor.u32 %v1011_v13, %v952_v11  ;;  %v1010_v18 = vld [vmem:[#allocation13 + $0xf4] sm:$0xf]  ;;  %v880_v20 = vld [vmem:[#allocation13 + $0x60] sm:$0xf] }
  0x36   :  { %v893_v17 = vor.u32 %v994_v14, %v890_v15  ;;  %v954_v19 = vld [vmem:[#allocation13 + $0xf8] sm:$0xf0]  ;;  %618 = vmatpush.bf16.msrb.mxu0 %v889_v12  ;;  %v993_v22 = vld [vmem:[#allocation13 + $0x64] sm:$0xf0]  ;;  %v944_v23 = vld [vmem:[#allocation13 + $0xe0] sm:$0xf] }
  0x37   :  { %381 = vmatpush.bf16.msra.mxu2 %v801_v37  ;;  %395 = vmatpush.bf16.msra.mxu3 %v805_v38  ;;  %v957_v21 = vor.u32 %v1010_v18, %v954_v19  ;;  %v1009_v24 = vld [vmem:[#allocation13 + $0xe4] sm:$0xf0]  ;;  %v881_v25 = vor.u32 %v993_v22, %v880_v20  ;;  %v992_v27 = vld [vmem:[#allocation13 + $0x64] sm:$0xf]  ;;  %v882_v28 = vld [vmem:[#allocation13 + $0x68] sm:$0xf0] }
  0x38   :  { %632 = vmatpush.bf16.msrb.mxu1 %v953_v16  ;;  %v945_v26 = vor.u32 %v1009_v24, %v944_v23  ;;  %v1008_v29 = vld [vmem:[#allocation13 + $0xe4] sm:$0xf]  ;;  %v885_v30 = vor.u32 %v992_v27, %v882_v28  ;;  %v946_v31 = vld [vmem:[#allocation13 + $0xe8] sm:$0xf0]  ;;  %v872_v32 = vld [vmem:[#allocation13 + $0x50] sm:$0xf] }
  0x39   :  { %v991_v33 = vld [vmem:[#allocation13 + $0x54] sm:$0xf0]  ;;  %v949_v34 = vor.u32 %v1008_v29, %v946_v31  ;;  %v936_v35 = vld [vmem:[#allocation13 + $0xd0] sm:$0xf]  ;;  %v990_v37 = vld [vmem:[#allocation13 + $0x54] sm:$0xf] }
  0x3a   :  { %v1007_v36 = vld [vmem:[#allocation13 + $0xd4] sm:$0xf0]  ;;  %619 = vmatpush.bf16.msrb.mxu0 %v881_v25  ;;  %v873_v38 = vor.u32 %v991_v33, %v872_v32  ;;  %v988_v49 = vld [vmem:[#allocation13 + $0x44] sm:$0xf]  ;;  %v866_v50 = vld [vmem:[#allocation13 + $0x48] sm:$0xf0] }
  0x3b   :  { %382 = vmatpush.bf16.msra.mxu2 %v793_v52  ;;  %396 = vmatpush.bf16.msra.mxu3 %v797_v54  ;;  %v1004_v51 = vld [vmem:[#allocation13 + $0xc4] sm:$0xf]  ;;  %v930_v52 = vld [vmem:[#allocation13 + $0xc8] sm:$0xf0]  ;;  %v869_v55 = vor.u32 %v988_v49, %v866_v50  ;;  %v856_v3 = vld [vmem:[#allocation13 + $0x30] sm:$0xf] }
  0x3c   :  { %633 = vmatpush.bf16.msrb.mxu1 %v945_v26  ;;  %v933_v56 = vor.u32 %v1004_v51, %v930_v52  ;;  %v987_v4 = vld [vmem:[#allocation13 + $0x34] sm:$0xf0]  ;;  %v920_v5 = vld [vmem:[#allocation13 + $0xb0] sm:$0xf]  ;;  %v858_v10 = vld [vmem:[#allocation13 + $0x38] sm:$0xf0] }
  0x3d   :  { %v1003_v7 = vld [vmem:[#allocation13 + $0xb4] sm:$0xf0]  ;;  %v1002_v11 = vld [vmem:[#allocation13 + $0xb4] sm:$0xf]  ;;  %v922_v12 = vld [vmem:[#allocation13 + $0xb8] sm:$0xf0] }
  0x3e   :  { %620 = vmatpush.bf16.msrb.mxu0 %v873_v38  ;;  %v921_v9 = vor.u32 %v1003_v7, %v920_v5  ;;  %v925_v14 = vor.u32 %v1002_v11, %v922_v12  ;;  %v848_v15 = vld [vmem:[#allocation13 + $0x20] sm:$0xf]  ;;  %v985_v16 = vld [vmem:[#allocation13 + $0x24] sm:$0xf0]  ;;  %v984_v20 = vld [vmem:[#allocation13 + $0x24] sm:$0xf] }
  0x3f   :  { %383 = vmatpush.bf16.msra.mxu2 %v785_v58  ;;  %397 = vmatpush.bf16.msra.mxu3 %v789_v60  ;;  %v1027_v58 = vld [vmem:[#allocation10] ss:$0 sm:$0xff]  ;;  %v849_v18 = vor.u32 %v985_v16, %v848_v15  ;;  %v1001_v19 = vld [vmem:[#allocation13 + $0xa4] sm:$0xf0]  ;;  %v1000_v24 = vld [vmem:[#allocation13 + $0xa4] sm:$0xf] }
  0x40   :  { %v914_v25 = vld [vmem:[#allocation13 + $0xa8] sm:$0xf0]  ;;  %v840_v27 = vld [vmem:[#allocation13 + $0x10] sm:$0xf]  ;;  %v983_v28 = vld [vmem:[#allocation13 + $0x14] sm:$0xf0] }
  0x41   :  { %v917_v26 = vor.u32 %v1000_v24, %v914_v25  ;;  %v904_v29 = vld [vmem:[#allocation13 + $0x90] sm:$0xf]  ;;  %v999_v31 = vld [vmem:[#allocation13 + $0x94] sm:$0xf0]  ;;  %v982_v32 = vld [vmem:[#allocation13 + $0x14] sm:$0xf] }
  0x42   :  { %v842_v33 = vld [vmem:[#allocation13 + $0x18] sm:$0xf0]  ;;  %v898_v49 = vld [vmem:[#allocation13 + $0x88] sm:$0xf0]  ;;  %vm686_vm11 = vcmask 1043458   ;;  %vm689_vm12 = vcmask 1045508  }
  0x43   :  { %384 = vmatpush.bf16.msra.mxu2 %v777_v0  ;;  %398 = vmatpush.bf16.msra.mxu3 %v781_v2  ;;  %v292_v51 = vld [vmem:[%s1361_s6] sm:$0x3]  ;;  %vm692_vm13 = vcmask 1045504  }
  0x47   :  { %385 = vmatpush.bf16.msra.mxu2 %v769_v6  ;;  %399 = vmatpush.bf16.msra.mxu3 %v773_v8  ;;  %v857_v6 = vor.u32 %v987_v4, %v856_v3  ;;  %v986_v8 = vld [vmem:[#allocation13 + $0x34] sm:$0xf] }
  0x48   :  { %v861_v13 = vor.u32 %v986_v8, %v858_v10  ;;  %v452_v8 = vld [vmem:[%s1363_s8] sm:$0x3] }
  0x49   :  { %v454_v10 = vperm.slane %v452_v8, 0  ;;  %v455_v11 = vperm.slane %v452_v8, 1 }
  0x4b   :  { %646 = vmatpush.bf16.msrb.mxu2 %v893_v17  ;;  %660 = vmatpush.bf16.msrb.mxu3 %v957_v21  ;;  %v912_v17 = vld [vmem:[#allocation13 + $0xa0] sm:$0xf]  ;;  %v850_v21 = vld [vmem:[#allocation13 + $0x28] sm:$0xf0] }
  0x4c   :  { %v913_v22 = vor.u32 %v1001_v19, %v912_v17  ;;  %v853_v23 = vor.u32 %v984_v20, %v850_v21 }
  0x4f   :  { %647 = vmatpush.bf16.msrb.mxu2 %v885_v30  ;;  %661 = vmatpush.bf16.msrb.mxu3 %v949_v34  ;;  %v841_v30 = vor.u32 %v983_v28, %v840_v27  ;;  %v905_v34 = vor.u32 %v999_v31, %v904_v29 }
  0xaf   :  { %v203_v39 = vpop.f32.mrf.mxu0 }
  0xb0   :  { %v204_v41 = vadd.f32 %v1026_v40, %v203_v39  ;;  %v874_v39 = vld [vmem:[#allocation13 + $0x58] sm:$0xf0] }
  0xb2   :  { %v210_v43 = vmul.f32 0.2, %v204_v41  ;;  %vm208_vm1 = vcmp.ge.f32.partialorder %v204_v41, 0.0 }
  0xb4   :  { %v212_v46 = vsel %vm208_vm1, %v204_v41, %v210_v43  ;;  %v938_v41 = vld [vmem:[#allocation13 + $0xd8] sm:$0xf0]  ;;  %v877_v43 = vor.u32 %v990_v37, %v874_v39  ;;  %v832_v39 = vld [vmem:[#allocation13] sm:$0xf] }
  0xb5   :  { %v906_v37 = vld [vmem:[#allocation13 + $0x98] sm:$0xf0] }
  0xb6   :  { %648 = vmatpush.bf16.msrb.mxu2 %v877_v43  ;;  %v997_v43 = vld [vmem:[#allocation13 + $0x84] sm:$0xf0] }
  0xb7   :  { %v205_v42 = vpop.f32.mrf.mxu0 }
  0xb8   :  { %v206_v44 = vadd.f32 %v1026_v40, %v205_v42  ;;  %v1006_v40 = vld [vmem:[#allocation13 + $0xd4] sm:$0xf]  ;;  %v937_v42 = vor.u32 %v1007_v36, %v936_v35  ;;  %v845_v35 = vor.u32 %v982_v32, %v842_v33 }
  0xb9   :  { %v998_v36 = vld [vmem:[#allocation13 + $0x94] sm:$0xf] }
  0xba   :  { %vm209_vm2 = vcmp.ge.f32.partialorder %v206_v44, 0.0  ;;  %v211_v45 = vmul.f32 0.2, %v206_v44  ;;  %634 = vmatpush.bf16.msrb.mxu1 %v937_v42  ;;  %649 = vmatpush.bf16.msrb.mxu2 %v869_v55  ;;  %v909_v38 = vor.u32 %v998_v36, %v906_v37  ;;  %v295_v55 = vperm.slane %v292_v51, 1 }
  0xbc   :  { %v213_v47 = vsel %vm209_vm2, %v206_v44, %v211_v45  ;;  %v864_v44 = vld [vmem:[#allocation13 + $0x40] sm:$0xf]  ;;  %v989_v45 = vld [vmem:[#allocation13 + $0x44] sm:$0xf0] }
  0xbd   :  { %v214_v48 = vpack.c.bf16 %v213_v47, %v212_v46  ;;  %v928_v46 = vld [vmem:[#allocation13 + $0xc0] sm:$0xf]  ;;  %v941_v47 = vor.u32 %v1006_v40, %v938_v41  ;;  %v865_v53 = vor.u32 %v989_v45, %v864_v44  ;;  %v981_v40 = vld [vmem:[#allocation13 + $0x4] sm:$0xf0]  ;;  %v980_v44 = vld [vmem:[#allocation13 + $0x4] sm:$0xf] }
  0xbe   :  { %650 = vmatpush.bf16.msrb.mxu2 %v861_v13  ;;  %v896_v41 = vld [vmem:[#allocation13 + $0x80] sm:$0xf]  ;;  %v833_v42 = vor.u32 %v981_v40, %v832_v39  ;;  %v834_v45 = vld [vmem:[#allocation13 + $0x8] sm:$0xf0] }
  0xbf   :  { %765 = vmatmul.msk.bf16.vlgmr.msra.gmra.mxu1 %vm251_vm3, %v214_v48  ;;  %v1005_v48 = vld [vmem:[#allocation13 + $0xc4] sm:$0xf0]  ;;  %662 = vmatpush.bf16.msrb.mxu3 %v941_v47  ;;  %v837_v47 = vor.u32 %v980_v44, %v834_v45 }
  0xc0   :  { %v929_v54 = vor.u32 %v1005_v48, %v928_v46  ;;  %621 = vmatpush.bf16.msrb.mxu0 %v865_v53  ;;  %v897_v46 = vor.u32 %v997_v43, %v896_v41  ;;  %v996_v48 = vld [vmem:[#allocation13 + $0x84] sm:$0xf] }
  0xc1   :  { %v901_v50 = vor.u32 %v996_v48, %v898_v49 }
  0xc2   :  { %635 = vmatpush.bf16.msrb.mxu1 %v929_v54  ;;  %651 = vmatpush.bf16.msrb.mxu2 %v853_v23  ;;  %v294_v54 = vperm.slane %v292_v51, 0 }
  0xc3   :  { %663 = vmatpush.bf16.msrb.mxu3 %v933_v56 }
  0xc4   :  { %622 = vmatpush.bf16.msrb.mxu0 %v857_v6 }
  0xc6   :  { %636 = vmatpush.bf16.msrb.mxu1 %v921_v9  ;;  %652 = vmatpush.bf16.msrb.mxu2 %v845_v35 }
  0xc7   :  { %664 = vmatpush.bf16.msrb.mxu3 %v925_v14 }
  0xc8   :  { %623 = vmatpush.bf16.msrb.mxu0 %v849_v18 }
  0xca   :  { %637 = vmatpush.bf16.msrb.mxu1 %v913_v22  ;;  %653 = vmatpush.bf16.msrb.mxu2 %v837_v47 }
  0xcb   :  { %665 = vmatpush.bf16.msrb.mxu3 %v917_v26 }
  0xcc   :  { %624 = vmatpush.bf16.msrb.mxu0 %v841_v30 }
  0xce   :  { %638 = vmatpush.bf16.msrb.mxu1 %v905_v34 }
  0xcf   :  { %666 = vmatpush.bf16.msrb.mxu3 %v909_v38 }
  0xd0   :  { %625 = vmatpush.bf16.msrb.mxu0 %v833_v42 }
  0xd2   :  { %639 = vmatpush.bf16.msrb.mxu1 %v897_v46 }
  0xd3   :  { %667 = vmatpush.bf16.msrb.mxu3 %v901_v50 }
 0x13c   :  { %v264_v57 = vpop.f32.mrf.mxu1 }
 0x13d   :  { %v265_v59 = vadd.f32 %v1027_v58, %v264_v57 }
 0x13f   :  { %v271_v61 = vmul.f32 0.2, %v265_v59  ;;  %vm269_vm4 = vcmp.ge.f32.partialorder %v265_v59, 0.0 }
 0x141   :  { %v273_v0 = vsel %vm269_vm4, %v265_v59, %v271_v61 }
 0x144   :  { %v266_v60 = vpop.f32.mrf.mxu1 }
 0x145   :  { %v267_v62 = vadd.f32 %v1027_v58, %v266_v60 }
 0x147   :  { %v272_v63 = vmul.f32 0.2, %v267_v62  ;;  %vm270_vm5 = vcmp.ge.f32.partialorder %v267_v62, 0.0 }
 0x149   :  { %v274_v1 = vsel %vm270_vm5, %v267_v62, %v272_v63 }
 0x14a   :  { %v275_v2 = vpack.c.bf16 %v274_v1, %v273_v0 }
 0x14c   :  { %386 = vmatmul.bf16.vlgmr.msra.gmra.mxu2 %v275_v2  ;;  %400 = vmatmul.bf16.vlgmr.msra.gmra.mxu3 %v275_v2 }
 0x1cf   :  { %v387_v52 = vpop.f32.mrf.mxu2  ;;  %v401_v53 = vpop.f32.mrf.mxu3 }
 0x1d0   :  { %v388_v56 = vadd.f32 %v387_v52, %v294_v54  ;;  %v402_v57 = vadd.f32 %v401_v53, %v295_v55 }
 0x1d2   :  { %v410_v60 = vmul.f32 0.2, %v388_v56  ;;  %v411_v61 = vmul.f32 0.2, %v402_v57  ;;  %vm406_vm6 = vcmp.ge.f32.partialorder %v388_v56, 0.0  ;;  %vm407_vm7 = vcmp.ge.f32.partialorder %v402_v57, 0.0 }
 0x1d4   :  { %v414_v2 = vsel %vm406_vm6, %v388_v56, %v410_v60  ;;  %v415_v4 = vsel %vm407_vm7, %v402_v57, %v411_v61 }
 0x1d7   :  { %v389_v58 = vpop.f32.mrf.mxu2  ;;  %v403_v59 = vpop.f32.mrf.mxu3 }
 0x1d8   :  { %v390_v62 = vadd.f32 %v389_v58, %v294_v54  ;;  %v404_v63 = vadd.f32 %v403_v59, %v295_v55 }
 0x1da   :  { %vm408_vm8 = vcmp.ge.f32.partialorder %v390_v62, 0.0  ;;  %v412_v0 = vmul.f32 0.2, %v390_v62  ;;  %vm409_vm9 = vcmp.ge.f32.partialorder %v404_v63, 0.0  ;;  %v413_v1 = vmul.f32 0.2, %v404_v63 }
 0x1dc   :  { %v416_v3 = vsel %vm408_vm8, %v390_v62, %v412_v0  ;;  %v417_v5 = vsel %vm409_vm9, %v404_v63, %v413_v1 }
 0x1dd   :  { %v418_v6 = vpack.c.bf16 %v416_v3, %v414_v2  ;;  %v419_v7 = vpack.c.bf16 %v417_v5, %v415_v4 }
 0x1df   :  { %626 = vmatmul.bf16.vlgmr.msrb.gmra.mxu0 %v418_v6  ;;  %640 = vmatmul.bf16.vlgmr.msrb.gmra.mxu1 %v419_v7 }
 0x1e0   :  { %654 = vmatmul.bf16.vlgmr.msrb.gmra.mxu2 %v418_v6  ;;  %668 = vmatmul.bf16.vlgmr.msrb.gmra.mxu3 %v419_v7 }
 0x25c   :  { %v627_v9 = vpop.f32.mrf.mxu0  ;;  %v641_v13 = vpop.f32.mrf.mxu1 }
 0x25d   :  { %v628_v12 = vadd.f32 %v627_v9, %v454_v10 }
 0x25f   :  { %v642_v17 = vadd.f32 %v641_v13, %v628_v12 }
 0x263   :  { %v655_v14 = vpop.f32.mrf.mxu2  ;;  %v669_v15 = vpop.f32.mrf.mxu3 }
 0x264   :  { %v656_v16 = vadd.f32 %v655_v14, %v455_v11  ;;  %v629_v19 = vpop.f32.mrf.mxu0  ;;  %v643_v23 = vpop.f32.mrf.mxu1 }
 0x265   :  { %v630_v20 = vadd.f32 %v629_v19, %v454_v10 }
 0x266   :  { %v670_v18 = vadd.f32 %v669_v15, %v656_v16 }
 0x267   :  { %v644_v26 = vadd.f32 %v643_v23, %v630_v20 }
 0x268   :  { %1028 = vtanh.f32 %v670_v18 }
 0x269   :  { %1030 = vtanh.f32 %v642_v17 }
 0x26b   :  { %v657_v21 = vpop.f32.mrf.mxu2  ;;  %v671_v24 = vpop.f32.mrf.mxu3 }
 0x26c   :  { %v658_v22 = vadd.f32 %v657_v21, %v455_v11 }
 0x26e   :  { %v1029_v25 = vpop.eup %1028  ;;  %v672_v27 = vadd.f32 %v671_v24, %v658_v22 }
 0x26f   :  { %v682_v28 = vrot.slane %v1029_v25, 6  ;;  %v1031_v29 = vpop.eup %1030 }
 0x270   :  { %1032 = vtanh.f32 %v672_v27 }
 0x271   :  { %v685_v30 = vsel %vm684_vm10, %v1031_v29, %v682_v28  ;;  %v687_v31 = vsel %vm686_vm11, %v1031_v29, %v682_v28  ;;  %v690_v32 = vsel %vm689_vm12, %v1031_v29, %v682_v28  ;;  %v693_v33 = vsel %vm692_vm13, %v682_v28, %v1031_v29 }
 0x272   :  { %v688_v34 = vrot.slane %v687_v31, 2  ;;  %v691_v35 = vrot.slane %v690_v32, 4  ;;  %v694_v36 = vrot.slane %v693_v33, 6  ;;  %710 = vst [vmem:[#allocation14] sm:$0xf] %v685_v30  ;;  %1034 = vtanh.f32 %v644_v26 }
 0x274   :  { %711 = vst [vmem:[#allocation14 + $0x4] sm:$0xf] %v688_v34 }
 0x275   :  { %712 = vst [vmem:[#allocation14 + $0x8] sm:$0xf] %v691_v35 }
 0x276   :  { %v1033_v37 = vpop.eup %1032  ;;  %713 = vst [vmem:[#allocation14 + $0xc] sm:$0xf] %v694_v36 }
 0x277   :  { %v683_v38 = vrot.slane %v1033_v37, 6 }
 0x278   :  { %v1035_v39 = vpop.eup %1034 }
 0x279   :  { %v695_v40 = vsel %vm684_vm10, %v1035_v39, %v683_v38  ;;  %v696_v41 = vsel %vm686_vm11, %v1035_v39, %v683_v38  ;;  %v698_v42 = vsel %vm689_vm12, %v1035_v39, %v683_v38  ;;  %v700_v43 = vsel %vm692_vm13, %v683_v38, %v1035_v39 }
 0x27a   :  { %v697_v44 = vrot.slane %v696_v41, 2  ;;  %v699_v45 = vrot.slane %v698_v42, 4  ;;  %v701_v46 = vrot.slane %v700_v43, 6  ;;  %714 = vst [vmem:[#allocation14 + $0x10] sm:$0xf] %v695_v40 }
 0x27c   :  { %715 = vst [vmem:[#allocation14 + $0x14] sm:$0xf] %v697_v44 }
 0x27d   :  { %716 = vst [vmem:[#allocation14 + $0x18] sm:$0xf] %v699_v45 }
 0x27e   :  { %717 = vst [vmem:[#allocation14 + $0x1c] sm:$0xf] %v701_v46 }
 0x27f   :  { %721 = vsyncadd [#allocation4], 448  ;;  %s724_s26 = sshll.u32 %s1364_s9, 4  ;;  %s1251_s27 = smov [#allocation14]   ;;  %s725_s26 = int_to_ptr.hbm [resolvable:$true] %s724_s26 }
 0x280   :  { %s722_s28 = sshll.u32 %s1251_s27, 4  ;;  %s723_s28 = int_to_ptr.vmem [resolvable:$true] %s722_s28 }
 0x281   :  { %730 = dma.vmem_to_hbm [thread:$0]  %s723_s28, 64, %s725_s26, [#allocation4], %s1239_s17, %s1239_s17, %s1240_s18  }
 0x282   :  { %1236 = dma.done.wait [#allocation4], 512  }
 0x283   :  { %1237 = vsyncadd [#allocation4], 4294966784 }
 0x284   :  { %735 = vsyncpa [#allocation3], 1 }
 0x285   :  { %736 = vsyncpa [#allocation6], 1 }
 0x286   :  { %737 = vsyncpa [#allocation9], 1 }
 0x287   :  { %738 = vsyncpa [#allocation12], 1 }
 0x288   :  { %739 = vsyncpa [#allocation4], 1 }

</bundles_post_ra>
